<compile_context>
chip_gen: v5e
topology: v5e:2x2
jax: 0.10.0
libtpu: 0.0.40
codegen_flags: <defaults>
</compile_context>

<pallas_src>
import functools

import jax
import jax.numpy as jnp
from jax.experimental import pallas as pl
from jax.experimental.pallas import tpu as pltpu

_MIN_STEPS = 4                 # minimum pipeline depth for non-trivial slabs
_MIN_STEP_BYTES = 256 * 1024   # never split below this per-step block size
_LANE_CHOICES = (512, 256, 128)


def _cdiv(a, b):
    return -(-a // b)


def _floor_mult(x, m):
    return (x // m) * m


def _sublane_align(dtype):
    itemsize = jnp.dtype(dtype).itemsize
    return {4: 8, 2: 16, 1: 32}.get(itemsize, 8)


def _chip_block_config():
    """(target_block_bytes, vmem_budget_bytes) tuned per TPU generation."""
    vmem_cap = 128 * 1024 * 1024
    try:
        info = pltpu.get_tpu_info()
        for attr in ("vmem_capacity_bytes", "vmem_bytes", "vmem_size_bytes"):
            v = getattr(info, attr, None)
            if v:
                vmem_cap = int(v)
                break
    except Exception:  # conservative fallback if the query is unavailable
        pass
    if vmem_cap <= 64 * 1024 * 1024:
        # v7x-class: ~3.2 TB/s HBM -> bigger blocks amortize the ~0.35us/step
        # overhead; 64 MiB physical VMEM -> keep the scoped budget well below it.
        return 8 * 1024 * 1024, 48 * 1024 * 1024
    # v5e/v6e (128 MiB VMEM): ~2-4 MiB blocks already sit near the HBM roofline.
    return 4 * 1024 * 1024, 64 * 1024 * 1024


def _vmem_limit(block_bytes, vmem_budget):
    # in + out, each double-buffered = 4x block; derive the limit from usage.
    need = 6 * block_bytes + 2 * 1024 * 1024
    return int(min(vmem_budget, max(16 * 1024 * 1024, need)))


# ---------------------------------------------------------------------------
# Tiling heuristics
# ---------------------------------------------------------------------------

def _tile_4d(n, rows, lane, itemsize, align, target_block):
    """(batch_tile, row_tile, grid_batch, grid_rows) for an (N, C, rows, lane) view."""
    bytes_per_row = 2 * lane * itemsize          # both channels, one batch, one row
    raw = max(1, target_block // bytes_per_row)
    rt = _floor_mult(raw, align) if raw >= align else raw
    if rt >= rows:
        rt = rows
    grid_rows = _cdiv(rows, rt)

    if grid_rows == 1:
        per_batch = 2 * rows * lane * itemsize
        bt = max(1, min(n, target_block // max(1, per_batch)))
    else:
        bt = 1
    grid_batch = _cdiv(n, bt)

    slab_bytes = n * 2 * rows * lane * itemsize
    if slab_bytes >= _MIN_STEPS * _MIN_STEP_BYTES:
        # Deepen the pipeline: >= _MIN_STEPS steps so DMA-in/compute/DMA-out overlap.
        while grid_batch * grid_rows < _MIN_STEPS:
            if rt > align:
                rt = max(align, _floor_mult(max(align, rt // 2), align))
                grid_rows = _cdiv(rows, rt)
            elif bt > 1:
                bt = max(1, bt // 2)
                grid_batch = _cdiv(n, bt)
            else:
                break
        # Even number of parallel steps -> balanced split across v7x's two TCs.
        if grid_batch * grid_rows >= 2 and (grid_batch * grid_rows) % 2 == 1:
            cand = rt - align
            while cand >= align:
                if (_cdiv(rows, cand) * grid_batch) % 2 == 0:
                    rt = cand
                    grid_rows = _cdiv(rows, rt)
                    break
                cand -= align
        if grid_batch * grid_rows >= 2 and (grid_batch * grid_rows) % 2 == 1 and bt > 1:
            cand = bt - 1
            while cand >= 1:
                if (grid_rows * _cdiv(n, cand)) % 2 == 0:
                    bt = cand
                    grid_batch = _cdiv(n, bt)
                    break
                cand -= 1
    return bt, rt, grid_batch, grid_rows


def _tile_fold(n, s, itemsize, align, target_block):
    """(batch_tile, grid_batch) for the folded (N, C*s) view (batch = sublanes)."""
    per_batch = s * itemsize                     # one channel, one batch row
    bt = max(1, min(n, target_block // max(1, per_batch)))
    if bt < n and bt >= align:
        bt = _floor_mult(bt, align)              # full sublane occupancy
    grid_batch = _cdiv(n, bt)

    slab_bytes = n * 2 * per_batch
    if slab_bytes >= _MIN_STEPS * _MIN_STEP_BYTES:
        while 2 * grid_batch < _MIN_STEPS and bt > align:
            bt = max(align, _floor_mult(max(align, bt // 2), align))
            grid_batch = _cdiv(n, bt)
    return bt, grid_batch


# ---------------------------------------------------------------------------
# Kernels
# ---------------------------------------------------------------------------

def _scale_channels_kernel(x_ref, o_ref, *, w_scale, h_scale):
    # Block (bt, 2, rt, lane).  Scalar-immediate multiplies on channel sub-views;
    # compute in f32, cast to the output dtype (exactness for bf16 inputs).
    o_ref[:, 0:1] = (x_ref[:, 0:1].astype(jnp.float32) * w_scale).astype(o_ref.dtype)
    o_ref[:, 1:2] = (x_ref[:, 1:2].astype(jnp.float32) * h_scale).astype(o_ref.dtype)


def _scale_folded_kernel(x_ref, o_ref, *, w_scale, h_scale):
    # Block (bt, s): grid axis 1 selects the channel (0 -> W/2, 1 -> H/2); batch
    # rows sit in the sublane dim so (align, 128) tiles are fully occupied.
    scale = jnp.where(pl.program_id(1) == 0, w_scale, h_scale).astype(jnp.float32)
    o_ref[...] = (x_ref[...].astype(jnp.float32) * scale).astype(o_ref.dtype)


# ---------------------------------------------------------------------------
# pallas_call wrappers
# ---------------------------------------------------------------------------

def _run_4d(x_view, rows, lane, w_scale, h_scale, target_block, vmem_budget, align):
    n = x_view.shape[0]
    itemsize = jnp.dtype(x_view.dtype).itemsize
    bt, rt, grid_batch, grid_rows = _tile_4d(n, rows, lane, itemsize, align, target_block)
    block = (bt, 2, rt, lane)
    block_bytes = bt * 2 * rt * lane * itemsize
    kernel = functools.partial(_scale_channels_kernel, w_scale=w_scale, h_scale=h_scale)
    return pl.pallas_call(
        kernel,
        out_shape=jax.ShapeDtypeStruct((n, 2, rows, lane), x_view.dtype),
        grid_spec=pltpu.PrefetchScalarGridSpec(
            num_scalar_prefetch=0,
            grid=(grid_batch, grid_rows),
            in_specs=[pl.BlockSpec(block, lambda b, r: (b, 0, r, 0))],
            out_specs=pl.BlockSpec(block, lambda b, r: (b, 0, r, 0)),
        ),
        compiler_params=pltpu.CompilerParams(
            dimension_semantics=("parallel", "parallel"),
            vmem_limit_bytes=_vmem_limit(block_bytes, vmem_budget),
        ),
    )(x_view)


def _run_fold(x_flat, s, w_scale, h_scale, target_block, vmem_budget, align):
    n = x_flat.shape[0]
    itemsize = jnp.dtype(x_flat.dtype).itemsize
    bt, grid_batch = _tile_fold(n, s, itemsize, align, target_block)
    block = (bt, s)
    block_bytes = bt * s * itemsize
    kernel = functools.partial(_scale_folded_kernel, w_scale=w_scale, h_scale=h_scale)
    return pl.pallas_call(
        kernel,
        out_shape=jax.ShapeDtypeStruct((n, 2 * s), x_flat.dtype),
        grid_spec=pltpu.PrefetchScalarGridSpec(
            num_scalar_prefetch=0,
            grid=(grid_batch, 2),
            in_specs=[pl.BlockSpec(block, lambda b, ch: (b, ch))],
            out_specs=pl.BlockSpec(block, lambda b, ch: (b, ch)),
        ),
        compiler_params=pltpu.CompilerParams(
            dimension_semantics=("parallel", "parallel"),
            vmem_limit_bytes=_vmem_limit(block_bytes, vmem_budget),
        ),
    )(x_flat)


def last_layer(x: jax.Array) -> jax.Array:
    """x: (N, C, H, W) with C >= 2.  Returns (N, 2, H, W)."""
    n, c, h, w = x.shape
    assert c >= 2, "LastLayer needs at least 2 input channels"

    align = _sublane_align(x.dtype)
    s = h * w
    w_scale = float(w) / 2.0
    h_scale = float(h) / 2.0
    target_block, vmem_budget = _chip_block_config()

    if s % 128 == 0:
        lane = None
        for cand in _LANE_CHOICES:
            if s % cand == 0 and (s // cand) >= align:
                lane = cand
                break
        if lane is not None:
            # Lane-dense (N, C, rows, lane) view; rows >= sublane alignment.
            rows = s // lane
            out = _run_4d(x.reshape(n, c, rows, lane), rows, lane,
                          w_scale, h_scale, target_block, vmem_budget, align)
            return out.reshape(n, 2, h, w)
        # Small spatial: fold channels into the lane dim, batch into sublanes.
        out = _run_fold(x.reshape(n, c * s), s,
                        w_scale, h_scale, target_block, vmem_budget, align)
        return out.reshape(n, 2, h, w)

    # H*W not a multiple of 128: NCHW with sublane-aligned, byte-bounded row tiles.
    # TODO(synk): pad W / H*W to a 128 multiple to recover lane-dense stores here.
    return _run_4d(x, h, w, w_scale, h_scale, target_block, vmem_budget, align)


# ---------------------------------------------------------------------------
# Self-test
# ---------------------------------------------------------------------------

def _reference(x):
    _, _, h, w = x.shape
    xf = x.astype(jnp.float32)
    out = jnp.concatenate([xf[:, 0:1] * (w / 2.0), xf[:, 1:2] * (h / 2.0)], axis=1)
    return out.astype(x.dtype)


if __name__ == "__main__":
    key = jax.random.PRNGKey(0)

    cases = [
        ((2, 4, 16, 16), jnp.float32),   # module's expected small NCHW input (fold path)
        ((2, 4, 8, 16), jnp.float32),    # H != W: verifies per-channel scales (fold path)
        ((2, 3, 32, 64), jnp.float32),   # odd channel count, lane-dense 4-D path
        ((2, 4, 9, 7), jnp.float32),     # non-128-multiple spatial (fallback path)
        ((2, 4, 16, 16), jnp.bfloat16),  # bf16: f32-compute scales, 16-sublane align
    ]
    for i, (shp, dt) in enumerate(cases):
        k = jax.random.fold_in(key, i)
        x = jax.random.normal(k, shp, dtype=jnp.float32).astype(dt)
        out = jax.block_until_ready(last_layer(x))
        expect = _reference(x)
        assert out.shape == (shp[0], 2, shp[2], shp[3]), (out.shape, shp)
        tol = 1e-6 if dt == jnp.float32 else 2e-2
        assert jnp.allclose(out.astype(jnp.float32), expect.astype(jnp.float32),
                            atol=tol, rtol=tol), ("mismatch", shp, dt)

    print("KERNEL_OK")
</pallas_src>

<mosaic_0001>
module attributes {stable_mosaic.version = 11 : i64} {
  func.func @_scale_folded_kernel(%arg0: i32, %arg1: i32, %arg2: memref<2x256xf32, #tpu.memory_space<vmem>>, %arg3: memref<2x256xf32, #tpu.memory_space<vmem>>) attributes {dimension_semantics = [#tpu.dimension_semantics<parallel>, #tpu.dimension_semantics<parallel>], iteration_bounds = array<i64: 1, 2>, scalar_prefetch = 0 : i64, scratch_operands = 0 : i64, tpu.core_type = #tpu.core_type<tc>, window_params = [{transform_indices = @transform_0, window_bounds = array<i64: 2, 256>}, {transform_indices = @transform_1, window_bounds = array<i64: 2, 256>}]} {
    %c0_i32 = arith.constant 0 : i32
    %0 = arith.cmpi eq, %arg1, %c0_i32 : i32
    %cst = arith.constant 8.000000e+00 : f32
    %cst_0 = arith.constant 8.000000e+00 : f32
    %1 = arith.select %0, %cst, %cst_0 : f32
    %c0 = arith.constant 0 : index
    %c0_1 = arith.constant 0 : index
    %2 = vector.load %arg2[%c0, %c0_1] : memref<2x256xf32, #tpu.memory_space<vmem>>, vector<2x256xf32>
    %3 = vector.broadcast %1 : f32 to vector<2x256xf32>
    %4 = arith.mulf %2, %3 : vector<2x256xf32>
    %c0_2 = arith.constant 0 : index
    %c0_3 = arith.constant 0 : index
    %5 = vector.load %arg3[%c0_2, %c0_3] : memref<2x256xf32, #tpu.memory_space<vmem>>, vector<2x256xf32>
    tpu.vector_store %arg3[%c0_2, %c0_3], %4 {strides = array<i32>} : memref<2x256xf32, #tpu.memory_space<vmem>>, vector<2x256xf32>,
    return
  }
  func.func @transform_0(%arg0: i32, %arg1: i32) -> (i32, i32) {
    %c0_i32 = arith.constant 0 : i32
    return %arg0, %arg1 : i32, i32
  }
  func.func @transform_1(%arg0: i32, %arg1: i32) -> (i32, i32) {
    %c0_i32 = arith.constant 0 : i32
    return %arg0, %arg1 : i32, i32
  }
}

</mosaic_0001>

<bundles_post_ra>
// kernel: tpu_custom_call.1
= control target key start
LH: loop header
LB: loop body
LE: loop exit
PB: predicated region body
PF: predicated region fallthrough
CT: control target
= control target key end

     0   :  { %6 = vsyncpa [#allocation3], 0  ;;  %s584_s0 = inlined_call_operand.hbm [shape: f32[2,1024], index: 0, kind: input, shape index: {}]   ;;  %s585_s1 = inlined_call_operand.hbm [shape: f32[2,512], index: 1, kind: output, shape index: {}]  }
   0x1   :  { %8 = vsyncpa [#allocation3 + $0x1], 0 }
   0x2   :  { %9 = vsyncpa [#allocation4], 0 }
   0x3   :  { %11 = vsyncpa [#allocation4 + $0x1], 0  ;;  %s464_s6 = smov 0   ;;  %s466_s7 = smov 0  }
   0x4   :  { %s468_s8 = smov 0   ;;  %s470_s9 = smov 0  }
   0x5   :  { %s472_s10 = smov 0   ;;  %s474_s11 = smov 0  }
   0x6 LB: > { %s261_s12 = sadd.s32 4294967295, %s452_s11   ;;  %s262_s13 = sadd.s32 4294967294, %s452_s11   ;;  %s452_s11 = sphi %s474_s11, %s17_s11   ;;  %s448_s10 = sphi %s472_s10, %s594_s10   ;;  %s444_s9 = sphi %s470_s9, %s593_s9   ;;  %s440_s8 = sphi %s468_s8, %s592_s8   ;;  %s436_s7 = sphi %s466_s7, %s591_s7   ;;  %s432_s6 = sphi %s464_s6, %s590_s6  }
   0x7   : > { %s26_s14 = sadd.s32 1, %s448_s10  ;;  %s38_s15 = sadd.s32 1, %s440_s8 }
   0x8   : > { %p27_p0 = scmp.ge.s32.totalorder %s26_s14, 2  ;;  %p45_p1 = scmp.ne.s32.totalorder %s440_s8, %s436_s7 }
   0x9   : > { %p46_p2 = scmp.eq.s32.totalorder %s452_s11, 0  ;;  %p51_p3 = scmp.ne.s32.totalorder %s436_s7, %s432_s6 }
   0xa   : > { %s596_s14 = smov (%p27_p0, %s26_s14), 0  ;;  %p52_p5 = scmp.eq.s32.totalorder %s261_s12, 0 }
   0xb   : > { %p505_p4 = por %p46_p2, %p45_p1  ;;  %s34_s17 = ssub.s32 %s448_s10, %s596_s14 }
   0xc   : > { %p77_p6 = scmp.eq.s32.totalorder %s261_s12, 1  ;;  %p36_p7 = scmp.eq.s32.totalorder %s34_s17, 0 }
   0xd   : > { %p511_p8 = por %p52_p5, %p51_p3  ;;  %p83_p10 = scmp.eq.s32.totalorder %s262_s13, 1 }
   0xe   : > { %p515_p9 = por %p77_p6, %p45_p1  ;;  %p264_p12 = scmp.ge.s32.totalorder %s452_s11, 2 }
   0xf   : > { %s520_s20 = scalar_select %p36_p7, %s440_s8, %s38_s15  }
  0x10   : > { %p522_p11 = por %p83_p10, %p51_p3  ;;  %p290_p13 = scmp.lt.s32.totalorder %s452_s11, 2 }
  0x11   : > { %s103_s22 = sand.u32 1, %s440_s8   ;;  %s276_s24 = sshll.u32 %s448_s10, 2 }
  0x12   : > { %s265_s23 = sshll.u32 %s103_s22, 2  ;;  %s114_s27 = scalar_lea.hbm %s584_s0, %s276_s24 }
  0x13   : > { %s107_s28 = scalar_lea.vmem [#allocation2], %s265_s23  ;;  %s116_s30 = sshll.u32 %s114_s27, 4  ;;  %s117_s30 = int_to_ptr.hbm [resolvable:$true] %s116_s30 }
  0x14   : > { %s118_s29 = sshll.u32 %s107_s28, 4  ;;  %p283_p0 = pnand %p290_p13, %p505_p4  ;;  %s119_s29 = int_to_ptr.vmem [resolvable:$true] %s118_s29 }
  0x15   : > { %p268_p1 = scmp.ge.s32.totalorder %s452_s11, 1  ;;  %p123_p2 = scmp.lt.s32.totalorder %s452_s11, 3 }
  0x16   : > { %s104_s2 = scalar_lea.sflag [#allocation3], %s103_s22 }
  0x17   : > { %285 = dma.hbm_to_vmem [thread:$0]  (!%p283_p0), %s117_s30, 64, %s119_s29, %s104_s2  }
  0x18   : > { %p124_p3 = pnand %p268_p1, %p123_p2 }
  0x19   : > { %s538_s3 = sand.u32 (!%p124_p3), 1, %s436_s7  }
  0x1a   : > { %127 = sbr.rel (%p124_p3) target bundleno = 47 (0x2f), region = 24  ;;  %s269_s4 = sshll.u32 (!%p124_p3), %s538_s3, 2 }
  0x1b   : > { %s130_s5 = scalar_lea.sflag (!%p124_p3), [#allocation3], %s538_s3  ;;  %s133_s12 = scalar_lea.vmem (!%p124_p3), [#allocation2], %s269_s4 }
  0x1f   : > { %423 = dma.done.wait (%p511_p8), %s130_s5, 64  }
  0x20   : > { %425 = vsyncadd (%p511_p8), %s130_s5, 4294967232  ;;  %s277_s13 = sshll.u32 %s444_s9, 2  ;;  %s152_s22 = scalar_lea.vmem [#allocation5], %s269_s4  ;;  %v155_v0 = vld [vmem:[%s133_s12] sm:$0xf] }
  0x21   : > { %s172_s17 = scalar_lea.hbm %s585_s1, %s277_s13  ;;  %s174_s23 = sshll.u32 %s152_s22, 4  ;;  %v156_v1 = vmul.f32 8.0, %v155_v0  ;;  %s175_s23 = int_to_ptr.vmem [resolvable:$true] %s174_s23 }
  0x22   : > { %s176_s24 = sshll.u32 %s172_s17, 4  ;;  %s159_s25 = scalar_lea.sflag [#allocation4], %s538_s3  ;;  %s177_s24 = int_to_ptr.hbm [resolvable:$true] %s176_s24 }
  0x23   : > { %157 = vst [vmem:[%s152_s22] sm:$0xf] %v156_v1  ;;  %s384_s26 = sshra.s32 %s177_s24, 4  ;;  %s390_s28 = scalar_lea.hbm %s585_s1, 8  ;;  %s385_s26 = int_to_ptr.hbm [resolvable:$true] %s384_s26 }
  0x24   : > { %s386_s18 = scalar_lea.hbm %s385_s26, 4  ;;  %p391_p7 = scmp.lt.s32.totalorder %s385_s26, %s585_s1 }
  0x25   : > { %p387_p4 = scmp.ne.s32.totalorder %s385_s26, %s386_s18  ;;  %p392_p8 = scmp.lt.s32.totalorder %s390_s28, %s386_s18 }
  0x27   : > { %p388_p5 = pnand %p387_p4, %p515_p9  ;;  %p393_p10 = por %p392_p8, %p391_p7 }
  0x29   : > { %p389_p6 = pneg %p388_p5 }
  0x2b   : > { %p394_p13 = pnand %p393_p10, %p389_p6 }
  0x2d   : > { %397 = shalt.err (!%p394_p13)
}
  0x2e   : > { %280 = dma.vmem_to_hbm [thread:$0]  (%p515_p9), %s175_s23, 64, %s177_s24, %s159_s25  }
  0x2f PF: > { %s188_s2 = sand.u32 1, %s432_s6   ;;  %p287_p0 = pnand %p264_p12, %p522_p11 }
  0x30   : > { %s189_s3 = scalar_lea.sflag [#allocation4], %s188_s2 }
  0x31   : > { %p288_p1 = pneg %p287_p0 }
  0x33   : > { %427 = dma.done.wait (%p288_p1), %s189_s3, 64  }
  0x34   : > { %429 = vsyncadd (%p288_p1), %s189_s3, 4294967232  ;;  %s17_s11 = sadd.s32 1, %s452_s11   ;;  %s590_s6 = smov %s436_s7 }
  0x35   : > { %p14_p2 = scmp.ge.s32.totalorder %s17_s11, 4   ;;  %s591_s7 = smov %s440_s8 }
  0x36   : > { %s592_s8 = smov %s520_s20  ;;  %s593_s9 = smov %s448_s10 }
  0x37   : > { %s594_s10 = smov %s596_s14  ;;  %16 = sbr.rel (!%p14_p2) target bundleno = 6 (0x6), region = 69 }
  0x3c   :  { %195 = vsyncpa [#allocation3], 1 }
  0x3d   :  { %197 = vsyncpa [#allocation3 + $0x1], 1 }
  0x3e   :  { %198 = vsyncpa [#allocation4], 1 }
  0x3f   :  { %200 = vsyncpa [#allocation4 + $0x1], 1 }

</bundles_post_ra>
